<compile_context>
chip_gen: v7x
topology: tpu7x:2x2x1
jax: 0.10.0
libtpu: 0.0.40
codegen_flags: <defaults>
</compile_context>

<pallas_src>
import functools

import jax
import jax.numpy as jnp
from jax.experimental import pallas as pl
from jax.experimental.pallas import tpu as pltpu

LN_EPS = 1e-5               # PyTorch nn.LayerNorm default
WEIGHT_FINAL_LAYER = 0.003
BIAS_FINAL_LAYER = 0.0003

_LANE = 128                 # TPU vreg lane width


def _round_up(x, m):
    return ((x + m - 1) // m) * m


def _num_tensorcores():
    """Best-effort detection of TensorCores per chip (2 on v7x, else 1)."""
    try:
        kind = jax.devices()[0].device_kind.lower()
    except Exception:
        return 1
    return 2 if ("v7" in kind or "tpu7" in kind) else 1


def _choose_batch_tile(batch, max_batch_tile, num_cores):
    """Pick (batch_tile, grid_steps).

    Single-TC parts: one grid step when the whole batch fits (per-grid-step
    overhead ~600 cycles dominates this ~MFLOP kernel, so fewer steps win).
    Dual-TC parts (v7x): at least 2 lane-aligned steps so ("parallel",) can
    shard the batch axis across both TensorCores.
    """
    if num_cores <= 1 and batch <= max_batch_tile:
        return batch, 1
    if batch < 2 * _LANE:   # too small to split into >=2 lane-dense tiles
        return batch, 1
    cap = max(_LANE, (max_batch_tile // _LANE) * _LANE)   # lane-aligned cap
    tb = min(cap, _round_up(pl.cdiv(batch, num_cores), _LANE))
    return tb, pl.cdiv(batch, tb)


def _choose_chunk(tb):
    """Lane-aligned sub-chunk size bounding vreg live ranges inside the kernel."""
    if tb <= 512:
        return tb
    for c in (512, 256, 128):
        if tb % c == 0:
            return c
    return tb


def _layer_norm_relu(h, gamma, beta):
    """LayerNorm over the feature axis (axis 0) + ReLU, feature-major layout.

    One-pass statistics: sum(h) and sum(h*h) are two independent XLU
    reductions (var = E[h^2] - E[h]^2, clipped at 0).  Slightly less robust
    than the two-pass form when |mean| >> std, but exact enough in f32 at
    these activation scales (verified against the two-pass reference).
    """
    inv_n = jnp.float32(1.0 / h.shape[0])
    s1 = jnp.sum(h, axis=0, keepdims=True)
    s2 = jnp.sum(h * h, axis=0, keepdims=True)
    mean = s1 * inv_n
    var = jnp.maximum(s2 * inv_n - mean * mean, 0.0)
    h = (h - mean) * jax.lax.rsqrt(var + LN_EPS)
    h = h * gamma + beta
    return jnp.maximum(h, 0.0)


def actor_kernel(x_ref, w1_ref, p1_ref, w2_ref, p2_ref, wmu_ref, bmu_ref,
                 out_ref, *, chunk):
    # Resident parameters (constant index_maps -> fetched once, stay in VMEM).
    w1 = w1_ref[...]                                               # [h1, d_in]
    b1, g1, be1 = p1_ref[:, 0:1], p1_ref[:, 1:2], p1_ref[:, 2:3]   # [h1, 1]
    w2 = w2_ref[...]                                               # [h2, h1]
    b2, g2, be2 = p2_ref[:, 0:1], p2_ref[:, 1:2], p2_ref[:, 2:3]   # [h2, 1]
    wmu = wmu_ref[...]                                             # [A, h2]
    bmu = bmu_ref[...]                                             # [A, 1]

    tb = x_ref.shape[0]
    n_chunks = tb // chunk        # static; chunk always divides the batch tile

    def compute(r0):
        x = x_ref[pl.ds(r0, chunk), :]              # [chunk, d_in] (batch-major)
        # h^T = W1 @ x^T : contract the shared d_in axis (trans_b matmul), so
        # activations come out feature-major ([h1, chunk]) with batch on lanes.
        h = jax.lax.dot_general(
            w1, x, (((1,), (1,)), ((), ())),
            preferred_element_type=jnp.float32) + b1
        h = _layer_norm_relu(h, g1, be1)

        h = jnp.dot(w2, h, preferred_element_type=jnp.float32) + b2
        h = _layer_norm_relu(h, g2, be2)

        mu = jnp.dot(wmu, h, preferred_element_type=jnp.float32) + bmu
        # Lane-dense store: last dim of the out block is the batch tile.
        out_ref[:, pl.ds(r0, chunk)] = jnp.tanh(mu)

    if n_chunks == 1:
        compute(0)
    else:
        def body(c, carry):
            compute(pl.multiple_of(c * chunk, chunk))
            return carry
        jax.lax.fori_loop(0, n_chunks, body, 0, unroll=True)


@functools.partial(jax.jit, static_argnames=("max_batch_tile",))
def actor_forward(state, params, *, max_batch_tile=1024):
    """state: [B, input_shape + goal_shape] float32 -> [B, num_actions]."""
    w1, p1, w2, p2, wmu, bmu = params
    batch, d_in = state.shape
    num_actions = wmu.shape[0]

    tb, steps = _choose_batch_tile(batch, max_batch_tile, _num_tensorcores())
    chunk = _choose_chunk(tb)

    def resident(shape):
        return pl.BlockSpec(shape, lambda i: (0, 0))

    out_t = pl.pallas_call(
        functools.partial(actor_kernel, chunk=chunk),
        out_shape=jax.ShapeDtypeStruct((num_actions, batch), jnp.float32),
        grid=(steps,),
        in_specs=[
            pl.BlockSpec((tb, d_in), lambda i: (i, 0)),   # pipelined state tile
            resident(w1.shape), resident(p1.shape),
            resident(w2.shape), resident(p2.shape),
            resident(wmu.shape), resident(bmu.shape),
        ],
        # Transposed, lane-dense output: last dim = tb (multiple of 128 when
        # tiled, or the full batch for a single step).
        out_specs=pl.BlockSpec((num_actions, tb), lambda i: (0, i)),
        compiler_params=pltpu.CompilerParams(
            dimension_semantics=("parallel",),   # shards batch across TCs on v7x
        ),
    )(state, w1, p1, w2, p2, wmu, bmu)

    # Tiny [num_actions, B] -> [B, num_actions] transpose in the wrapper.
    return out_t.T


def init_actor_params(key, input_shape, hidden_shape, num_actions, is_her=True):
    """Deterministic init mirroring Actor.init_weight_bias (uniform ranges).

    Weights are kept in PyTorch [out_features, in_features] layout (exactly
    what the feature-major kernel consumes).  LayerNorm bias/gamma/beta of
    each layer are packed into a single [h, 3] slab.
    """
    goal_shape = 3 if is_her else 0
    d_in = input_shape + goal_shape
    h1, h2 = hidden_shape

    ks = jax.random.split(key, 6)

    # PyTorch code uses weight.size()[0] (== out_features) for both bounds.
    bw1 = 1.0 / float(h1) ** 0.5
    bw2 = 1.0 / float(h2) ** 0.5

    w1 = jax.random.uniform(ks[0], (h1, d_in), jnp.float32, -bw1, bw1)
    b1 = jax.random.uniform(ks[1], (h1,), jnp.float32, -bw1, bw1)
    w2 = jax.random.uniform(ks[2], (h2, h1), jnp.float32, -bw2, bw2)
    b2 = jax.random.uniform(ks[3], (h2,), jnp.float32, -bw2, bw2)
    wmu = jax.random.uniform(ks[4], (num_actions, h2), jnp.float32,
                             -WEIGHT_FINAL_LAYER, WEIGHT_FINAL_LAYER)
    bmu = jax.random.uniform(ks[5], (num_actions,), jnp.float32,
                             -BIAS_FINAL_LAYER, BIAS_FINAL_LAYER)

    # LayerNorm affine params (PyTorch default init: weight=1, bias=0).
    p1 = jnp.stack([b1, jnp.ones((h1,), jnp.float32),
                    jnp.zeros((h1,), jnp.float32)], axis=1)        # [h1, 3]
    p2 = jnp.stack([b2, jnp.ones((h2,), jnp.float32),
                    jnp.zeros((h2,), jnp.float32)], axis=1)        # [h2, 3]

    return (w1, p1, w2, p2, wmu, bmu[:, None])


def actor_reference(state, params):
    """Pure-JAX reference (two-pass LayerNorm, like PyTorch) for checking."""
    w1, p1, w2, p2, wmu, bmu = params
    b1, g1, be1 = p1[:, 0], p1[:, 1], p1[:, 2]
    b2, g2, be2 = p2[:, 0], p2[:, 1], p2[:, 2]

    def ln(h, g, b):
        m = jnp.mean(h, axis=-1, keepdims=True)
        v = jnp.mean((h - m) ** 2, axis=-1, keepdims=True)
        return (h - m) / jnp.sqrt(v + LN_EPS) * g + b

    h = jnp.maximum(ln(state @ w1.T + b1, g1, be1), 0.0)
    h = jnp.maximum(ln(h @ w2.T + b2, g2, be2), 0.0)
    return jnp.tanh(h @ wmu.T + bmu[:, 0])


# TODO(synk): Adam optimizer, save_model/load_model file I/O and os.makedirs
# from the PyTorch module are host-side concerns with no Pallas equivalent.

if __name__ == "__main__":
    # Small shapes consistent with the module's forward.
    batch = 2
    input_shape = 16          # env observation size
    hidden_shape = (32, 32)
    num_actions = 4
    is_her = True             # forward expects state already concat'd with goal

    key = jax.random.PRNGKey(0)
    pkey, xkey = jax.random.split(key)
    params = init_actor_params(pkey, input_shape, hidden_shape, num_actions, is_her)

    d_in = input_shape + (3 if is_her else 0)
    state = jax.random.normal(xkey, (batch, d_in), dtype=jnp.float32)

    out = jax.block_until_ready(actor_forward(state, params))
    ref = actor_reference(state, params)
    assert out.shape == (batch, num_actions)
    assert jnp.allclose(out, ref, atol=1e-5, rtol=1e-5), "mismatch vs reference"

    # Multi-grid-step path: lane-dense 128-wide tiles including a partial
    # final block (300 = 2*128 + 44), forced via a small max_batch_tile.
    big_state = jax.random.normal(jax.random.PRNGKey(1), (300, d_in), jnp.float32)
    big_out = jax.block_until_ready(
        actor_forward(big_state, params, max_batch_tile=128))
    big_ref = actor_reference(big_state, params)
    assert big_out.shape == (300, num_actions)
    assert jnp.allclose(big_out, big_ref, atol=1e-5, rtol=1e-5), "mismatch (tiled)"

    print("KERNEL_OK")
</pallas_src>

<mosaic_0001>
module attributes {stable_mosaic.version = 11 : i64} {
  func.func @actor_kernel(%arg0: i32, %arg1: memref<2x19xf32, #tpu.memory_space<vmem>>, %arg2: memref<32x19xf32, #tpu.memory_space<vmem>>, %arg3: memref<32x3xf32, #tpu.memory_space<vmem>>, %arg4: memref<32x32xf32, #tpu.memory_space<vmem>>, %arg5: memref<32x3xf32, #tpu.memory_space<vmem>>, %arg6: memref<4x32xf32, #tpu.memory_space<vmem>>, %arg7: memref<4x1xf32, #tpu.memory_space<vmem>>, %arg8: memref<4x2xf32, #tpu.memory_space<vmem>>) attributes {dimension_semantics = [#tpu.dimension_semantics<parallel>], iteration_bounds = array<i64: 1>, scalar_prefetch = 0 : i64, scratch_operands = 0 : i64, tpu.core_type = #tpu.core_type<tc>, window_params = [{transform_indices = @transform_0, window_bounds = array<i64: 2, 19>}, {pipeline_mode = #tpu.pipeline_mode<synchronous>, transform_indices = @transform_1, window_bounds = array<i64: 32, 19>}, {pipeline_mode = #tpu.pipeline_mode<synchronous>, transform_indices = @transform_2, window_bounds = array<i64: 32, 3>}, {pipeline_mode = #tpu.pipeline_mode<synchronous>, transform_indices = @transform_3, window_bounds = array<i64: 32, 32>}, {pipeline_mode = #tpu.pipeline_mode<synchronous>, transform_indices = @transform_4, window_bounds = array<i64: 32, 3>}, {pipeline_mode = #tpu.pipeline_mode<synchronous>, transform_indices = @transform_5, window_bounds = array<i64: 4, 32>}, {pipeline_mode = #tpu.pipeline_mode<synchronous>, transform_indices = @transform_6, window_bounds = array<i64: 4, 1>}, {transform_indices = @transform_7, window_bounds = array<i64: 4, 2>}]} {
    %c0 = arith.constant 0 : index
    %c0_0 = arith.constant 0 : index
    %0 = vector.load %arg2[%c0, %c0_0] : memref<32x19xf32, #tpu.memory_space<vmem>>, vector<32x19xf32>
    %c0_1 = arith.constant 0 : index
    %c0_2 = arith.constant 0 : index
    %1 = vector.load %arg3[%c0_1, %c0_2] : memref<32x3xf32, #tpu.memory_space<vmem>>, vector<32x1xf32>
    %c0_3 = arith.constant 0 : index
    %c1 = arith.constant 1 : index
    %2 = vector.load %arg3[%c0_3, %c1] : memref<32x3xf32, #tpu.memory_space<vmem>>, vector<32x1xf32>
    %c0_4 = arith.constant 0 : index
    %c2 = arith.constant 2 : index
    %3 = vector.load %arg3[%c0_4, %c2] : memref<32x3xf32, #tpu.memory_space<vmem>>, vector<32x1xf32>
    %c0_5 = arith.constant 0 : index
    %c0_6 = arith.constant 0 : index
    %4 = vector.load %arg4[%c0_5, %c0_6] : memref<32x32xf32, #tpu.memory_space<vmem>>, vector<32x32xf32>
    %c0_7 = arith.constant 0 : index
    %c0_8 = arith.constant 0 : index
    %5 = vector.load %arg5[%c0_7, %c0_8] : memref<32x3xf32, #tpu.memory_space<vmem>>, vector<32x1xf32>
    %c0_9 = arith.constant 0 : index
    %c1_10 = arith.constant 1 : index
    %6 = vector.load %arg5[%c0_9, %c1_10] : memref<32x3xf32, #tpu.memory_space<vmem>>, vector<32x1xf32>
    %c0_11 = arith.constant 0 : index
    %c2_12 = arith.constant 2 : index
    %7 = vector.load %arg5[%c0_11, %c2_12] : memref<32x3xf32, #tpu.memory_space<vmem>>, vector<32x1xf32>
    %c0_13 = arith.constant 0 : index
    %c0_14 = arith.constant 0 : index
    %8 = vector.load %arg6[%c0_13, %c0_14] : memref<4x32xf32, #tpu.memory_space<vmem>>, vector<4x32xf32>
    %c0_15 = arith.constant 0 : index
    %c0_16 = arith.constant 0 : index
    %9 = vector.load %arg7[%c0_15, %c0_16] : memref<4x1xf32, #tpu.memory_space<vmem>>, vector<4x1xf32>
    %c0_17 = arith.constant 0 : index
    %c0_18 = arith.constant 0 : index
    %10 = vector.load %arg1[%c0_17, %c0_18] : memref<2x19xf32, #tpu.memory_space<vmem>>, vector<2x19xf32>
    %cst = arith.constant dense<0.000000e+00> : vector<32x2xf32>
    %11 = tpu.matmul %0, %10, %cst {dimension_numbers = #tpu.dot_dimension_numbers<[1], [1], [0], [0], [0, 0, 1, 0], [], []>} : vector<32x19xf32>, vector<2x19xf32>, vector<32x2xf32> -> vector<32x2xf32>
    %12 = vector.broadcast %1 : vector<32x1xf32> to vector<32x2xf32>
    %13 = arith.addf %11, %12 : vector<32x2xf32>
    %cst_19 = arith.constant dense<0.000000e+00> : vector<2xf32>
    %14 = vector.multi_reduction <add>, %13, %cst_19 [0] : vector<32x2xf32> to vector<2xf32>
    %15 = vector.shape_cast %14 : vector<2xf32> to vector<1x2xf32>
    %16 = arith.mulf %13, %13 : vector<32x2xf32>
    %cst_20 = arith.constant dense<0.000000e+00> : vector<2xf32>
    %17 = vector.multi_reduction <add>, %16, %cst_20 [0] : vector<32x2xf32> to vector<2xf32>
    %18 = vector.shape_cast %17 : vector<2xf32> to vector<1x2xf32>
    %cst_21 = arith.constant 3.125000e-02 : f32
    %19 = vector.broadcast %cst_21 : f32 to vector<1x2xf32>
    %20 = arith.mulf %15, %19 : vector<1x2xf32>
    %cst_22 = arith.constant 3.125000e-02 : f32
    %21 = vector.broadcast %cst_22 : f32 to vector<1x2xf32>
    %22 = arith.mulf %18, %21 : vector<1x2xf32>
    %23 = arith.mulf %20, %20 : vector<1x2xf32>
    %24 = arith.subf %22, %23 : vector<1x2xf32>
    %cst_23 = arith.constant 0.000000e+00 : f32
    %25 = vector.broadcast %cst_23 : f32 to vector<1x2xf32>
    %26 = arith.maximumf %24, %25 : vector<1x2xf32>
    %27 = vector.broadcast %20 : vector<1x2xf32> to vector<32x2xf32>
    %28 = arith.subf %13, %27 : vector<32x2xf32>
    %cst_24 = arith.constant 9.99999974E-6 : f32
    %29 = vector.broadcast %cst_24 : f32 to vector<1x2xf32>
    %30 = arith.addf %26, %29 : vector<1x2xf32>
    %31 = math.rsqrt %30 : vector<1x2xf32>
    %32 = vector.broadcast %31 : vector<1x2xf32> to vector<32x2xf32>
    %33 = arith.mulf %28, %32 : vector<32x2xf32>
    %34 = vector.broadcast %2 : vector<32x1xf32> to vector<32x2xf32>
    %35 = arith.mulf %33, %34 : vector<32x2xf32>
    %36 = vector.broadcast %3 : vector<32x1xf32> to vector<32x2xf32>
    %37 = arith.addf %35, %36 : vector<32x2xf32>
    %cst_25 = arith.constant 0.000000e+00 : f32
    %38 = vector.broadcast %cst_25 : f32 to vector<32x2xf32>
    %39 = arith.maximumf %37, %38 : vector<32x2xf32>
    %cst_26 = arith.constant dense<0.000000e+00> : vector<32x2xf32>
    %40 = tpu.matmul %4, %39, %cst_26 {dimension_numbers = #tpu.dot_dimension_numbers<[1], [0], [0], [1], [0, 0, 1, 1], [], []>} : vector<32x32xf32>, vector<32x2xf32>, vector<32x2xf32> -> vector<32x2xf32>
    %41 = vector.broadcast %5 : vector<32x1xf32> to vector<32x2xf32>
    %42 = arith.addf %40, %41 : vector<32x2xf32>
    %cst_27 = arith.constant dense<0.000000e+00> : vector<2xf32>
    %43 = vector.multi_reduction <add>, %42, %cst_27 [0] : vector<32x2xf32> to vector<2xf32>
    %44 = vector.shape_cast %43 : vector<2xf32> to vector<1x2xf32>
    %45 = arith.mulf %42, %42 : vector<32x2xf32>
    %cst_28 = arith.constant dense<0.000000e+00> : vector<2xf32>
    %46 = vector.multi_reduction <add>, %45, %cst_28 [0] : vector<32x2xf32> to vector<2xf32>
    %47 = vector.shape_cast %46 : vector<2xf32> to vector<1x2xf32>
    %cst_29 = arith.constant 3.125000e-02 : f32
    %48 = vector.broadcast %cst_29 : f32 to vector<1x2xf32>
    %49 = arith.mulf %44, %48 : vector<1x2xf32>
    %cst_30 = arith.constant 3.125000e-02 : f32
    %50 = vector.broadcast %cst_30 : f32 to vector<1x2xf32>
    %51 = arith.mulf %47, %50 : vector<1x2xf32>
    %52 = arith.mulf %49, %49 : vector<1x2xf32>
    %53 = arith.subf %51, %52 : vector<1x2xf32>
    %cst_31 = arith.constant 0.000000e+00 : f32
    %54 = vector.broadcast %cst_31 : f32 to vector<1x2xf32>
    %55 = arith.maximumf %53, %54 : vector<1x2xf32>
    %56 = vector.broadcast %49 : vector<1x2xf32> to vector<32x2xf32>
    %57 = arith.subf %42, %56 : vector<32x2xf32>
    %cst_32 = arith.constant 9.99999974E-6 : f32
    %58 = vector.broadcast %cst_32 : f32 to vector<1x2xf32>
    %59 = arith.addf %55, %58 : vector<1x2xf32>
    %60 = math.rsqrt %59 : vector<1x2xf32>
    %61 = vector.broadcast %60 : vector<1x2xf32> to vector<32x2xf32>
    %62 = arith.mulf %57, %61 : vector<32x2xf32>
    %63 = vector.broadcast %6 : vector<32x1xf32> to vector<32x2xf32>
    %64 = arith.mulf %62, %63 : vector<32x2xf32>
    %65 = vector.broadcast %7 : vector<32x1xf32> to vector<32x2xf32>
    %66 = arith.addf %64, %65 : vector<32x2xf32>
    %cst_33 = arith.constant 0.000000e+00 : f32
    %67 = vector.broadcast %cst_33 : f32 to vector<32x2xf32>
    %68 = arith.maximumf %66, %67 : vector<32x2xf32>
    %cst_34 = arith.constant dense<0.000000e+00> : vector<4x2xf32>
    %69 = tpu.matmul %8, %68, %cst_34 {dimension_numbers = #tpu.dot_dimension_numbers<[1], [0], [0], [1], [0, 0, 1, 1], [], []>} : vector<4x32xf32>, vector<32x2xf32>, vector<4x2xf32> -> vector<4x2xf32>
    %70 = vector.broadcast %9 : vector<4x1xf32> to vector<4x2xf32>
    %71 = arith.addf %69, %70 : vector<4x2xf32>
    %72 = math.tanh %71 : vector<4x2xf32>
    %c0_35 = arith.constant 0 : index
    %c0_36 = arith.constant 0 : index
    %73 = vector.load %arg8[%c0_35, %c0_36] : memref<4x2xf32, #tpu.memory_space<vmem>>, vector<4x2xf32>
    tpu.vector_store %arg8[%c0_35, %c0_36], %72 {strides = array<i32>} : memref<4x2xf32, #tpu.memory_space<vmem>>, vector<4x2xf32>,
    return
  }
  func.func @transform_0(%arg0: i32) -> (i32, i32) {
    %c0_i32 = arith.constant 0 : i32
    %c0_i32_0 = arith.constant 0 : i32
    return %arg0, %c0_i32 : i32, i32
  }
  func.func @transform_1(%arg0: i32) -> (i32, i32) {
    %c0_i32 = arith.constant 0 : i32
    %c0_i32_0 = arith.constant 0 : i32
    %c0_i32_1 = arith.constant 0 : i32
    return %c0_i32, %c0_i32_0 : i32, i32
  }
  func.func @transform_2(%arg0: i32) -> (i32, i32) {
    %c0_i32 = arith.constant 0 : i32
    %c0_i32_0 = arith.constant 0 : i32
    %c0_i32_1 = arith.constant 0 : i32
    return %c0_i32, %c0_i32_0 : i32, i32
  }
  func.func @transform_3(%arg0: i32) -> (i32, i32) {
    %c0_i32 = arith.constant 0 : i32
    %c0_i32_0 = arith.constant 0 : i32
    %c0_i32_1 = arith.constant 0 : i32
    return %c0_i32, %c0_i32_0 : i32, i32
  }
  func.func @transform_4(%arg0: i32) -> (i32, i32) {
    %c0_i32 = arith.constant 0 : i32
    %c0_i32_0 = arith.constant 0 : i32
    %c0_i32_1 = arith.constant 0 : i32
    return %c0_i32, %c0_i32_0 : i32, i32
  }
  func.func @transform_5(%arg0: i32) -> (i32, i32) {
    %c0_i32 = arith.constant 0 : i32
    %c0_i32_0 = arith.constant 0 : i32
    %c0_i32_1 = arith.constant 0 : i32
    return %c0_i32, %c0_i32_0 : i32, i32
  }
  func.func @transform_6(%arg0: i32) -> (i32, i32) {
    %c0_i32 = arith.constant 0 : i32
    %c0_i32_0 = arith.constant 0 : i32
    %c0_i32_1 = arith.constant 0 : i32
    return %c0_i32, %c0_i32_0 : i32, i32
  }
  func.func @transform_7(%arg0: i32) -> (i32, i32) {
    %c0_i32 = arith.constant 0 : i32
    %c0_i32_0 = arith.constant 0 : i32
    return %c0_i32, %arg0 : i32, i32
  }
}

</mosaic_0001>

<bundles_post_ra>
// kernel: actor_forward.1
= control target key start
LH: loop header
LB: loop body
LE: loop exit
PB: predicated region body
PF: predicated region fallthrough
CT: control target
= control target key end

     0   :  { %vm65_vm0 = vcmask 154624   ;;  %v653_v2 = vmov 0   ;;  %v654_v10 = vmov 1   ;;  %v655_v11 = vmov 2   ;;  %s794_s0 = inlined_call_operand.vmem [shape: f32[2,19], index: 0, kind: input, shape index: {}]   ;;  %s795_s1 = inlined_call_operand.vmem [shape: f32[32,19], index: 1, kind: input, shape index: {}]   ;;  %s796_s2 = inlined_call_operand.vmem [shape: f32[32,3], index: 2, kind: input, shape index: {}]   ;;  %s797_s3 = inlined_call_operand.vmem [shape: f32[32,32], index: 3, kind: input, shape index: {}]   ;;  %s798_s4 = inlined_call_operand.vmem [shape: f32[32,3], index: 4, kind: input, shape index: {}]   ;;  %s799_s6 = inlined_call_operand.vmem [shape: f32[4,1], index: 6, kind: input, shape index: {}]   ;;  %s800_s5 = inlined_call_operand.vmem [shape: f32[4,32], index: 5, kind: input, shape index: {}]   ;;  %s801_s7 = inlined_call_operand.vmem [shape: f32[4,2], index: 7, kind: output, shape index: {}]  }
   0x1   :  { %v44_v0 = vld [vmem:[%s794_s0] sm:$0x3]  ;;  %629 = vset.pattern.permute.xlu0 %v653_v2  ;;  %630 = vset.pattern.permute.xlu1 %v653_v2  ;;  %v27_v4 = vld [vmem:[%s795_s1 + $0x8] sm:$0xff]  ;;  %v32_v5 = vld [vmem:[%s796_s2 + $0x10] sm:$0xff]  ;;  %vm276_vm1 = vcmask 261120   ;;  %vm166_vm2 = vcmask 15360  }
   0x2   :  { %v26_v1 = vld [vmem:[%s795_s1] sm:$0xff]  ;;  %576 = vmatprep.subr.msk.mxu0 %vm65_vm0, %v44_v0  ;;  %v28_v6 = vld [vmem:[%s795_s1 + $0x10] sm:$0xff]  ;;  %57 = vperm.xlu1 %630, %v32_v5   ;;  %v31_v7 = vld [vmem:[%s796_s2 + $0x8] sm:$0xff]  ;;  %vm657_vm3 = vmmov 0   ;;  %vm542_vm4 = vcmask 11264  }
   0x3   :  { %578 = vmatprep.mubr.msk.f32.mxu0 %vm65_vm0, %v26_v1  ;;  %v30_v3 = vld [vmem:[%s796_s2] sm:$0xff]  ;;  %577 = vmatpush3.xpose.msk.msra.mxu0 %vm65_vm0, %v44_v0  ;;  %v33_v8 = vld [vmem:[%s796_s2 + $0x18] sm:$0xff]  ;;  %v39_v13 = vld [vmem:[%s798_s4 + $0x8] sm:$0xff] }
   0x4   :  { %47 = vperm.xlu0 %629, %v30_v3   ;;  %v29_v9 = vld [vmem:[%s795_s1 + $0x18] sm:$0xff]  ;;  %v34_v12 = vld [vmem:[%s797_s3] sm:$0xff]  ;;  %v40_v15 = vld [vmem:[%s798_s4 + $0x10] sm:$0xff] }
   0x5   :  { %592 = vmatprep.mubr.msk.f32.mxu1 %vm276_vm1, %v34_v12  ;;  %v38_v14 = vld [vmem:[%s798_s4] sm:$0xff]  ;;  %v41_v16 = vld [vmem:[%s798_s4 + $0x18] sm:$0xff] }
   0x6   :  { %579 = vmatmul.mubr.msk.f32.vlgmr.msra.gmra.mrb[0].mxu0 %vm65_vm0, %v27_v4  ;;  %62 = vperm.xlu1 %630, %v33_v8  }
   0x7   :  { %581 = vmatprep.mubr.msk.f32.mxu0 %vm65_vm0, %v28_v6 }
   0x8   :  { %52 = vperm.xlu0 %629, %v31_v7  }
   0xa   :  { %582 = vmatmul.mubr.msk.f32.gmra.mrb[2].mxu0 %vm65_vm0, %v29_v9  ;;  %632 = vset.pattern.permute.xlu1 %v654_v10 }
   0xb   :  { %217 = vperm.xlu1 %632, %v31_v7  }
   0xc   :  { %631 = vset.pattern.permute.xlu0 %v654_v10 }
   0xd   :  { %213 = vperm.xlu0 %631, %v30_v3  }
   0xf   :  { %633 = vset.pattern.permute.xlu1 %v655_v11 }
  0x10   :  { %233 = vperm.xlu1 %633, %v30_v3  }
  0x11   :  { %634 = vset.pattern.permute.xlu0 %v655_v11 }
  0x12   :  { %237 = vperm.xlu0 %634, %v31_v7  }
  0x14   :  { %635 = vset.pattern.permute.xlu1 %v654_v10 }
  0x15   :  { %221 = vperm.xlu1 %635, %v32_v5  }
  0x16   :  { %241 = vperm.xlu0 %634, %v32_v5  }
  0x19   :  { %225 = vperm.xlu1 %635, %v33_v8  }
  0x1a   :  { %637 = vset.pattern.permute.xlu0 %v653_v2 }
  0x1b   :  { %258 = vperm.xlu0 %637, %v38_v14  }
  0x1d   :  { %636 = vset.pattern.permute.xlu1 %v655_v11 }
  0x1e   :  { %245 = vperm.xlu1 %636, %v33_v8  }
  0x1f   :  { %273 = vperm.xlu0 %637, %v41_v16  }
  0x22   :  { %638 = vset.pattern.permute.xlu1 %v653_v2 }
  0x23   :  { %263 = vperm.xlu1 %638, %v39_v13   ;;  %640 = vset.pattern.permute.xlu0 %v654_v10 }
  0x24   :  { %424 = vperm.xlu0 %640, %v39_v13  }
  0x27   :  { %268 = vperm.xlu1 %638, %v40_v15  }
  0x28   :  { %428 = vperm.xlu0 %640, %v40_v15  }
  0x2b   :  { %639 = vset.pattern.permute.xlu1 %v654_v10 }
  0x2c   :  { %420 = vperm.xlu1 %639, %v38_v14   ;;  %643 = vset.pattern.permute.xlu0 %v655_v11 }
  0x2d   :  { %448 = vperm.xlu0 %643, %v40_v15  }
  0x30   :  { %641 = vset.pattern.permute.xlu1 %v655_v11 }
  0x31   :  { %440 = vperm.xlu1 %641, %v38_v14   ;;  %646 = vset.pattern.permute.xlu0 %v653_v2 }
  0x35   :  { %444 = vperm.xlu1 %641, %v39_v13  }
  0x39   :  { %642 = vset.pattern.permute.xlu1 %v654_v10 }
  0x3a   :  { %432 = vperm.xlu1 %642, %v41_v16  }
  0x3e   :  { %644 = vset.pattern.permute.xlu1 %v655_v11 }
  0x3f   :  { %452 = vperm.xlu1 %644, %v41_v16  }
  0x43   :  { %645 = vset.pattern.permute.xlu1 %v653_v2 }
  0x81   :  { %v58_v18 = vpop.permute.xlu1 %57 }
  0x83   :  { %v48_v17 = vpop.permute.xlu0 %47 }
  0x85   :  { %v63_v24 = vpop.permute.xlu1 %62 }
  0x87   :  { %v53_v19 = vpop.permute.xlu0 %52 }
  0x8a   :  { %v218_v58 = vpop.permute.xlu1 %217 }
  0x8c   :  { %v214_v8 = vpop.permute.xlu0 %213 }
  0x8f   :  { %v234_v4 = vpop.permute.xlu1 %233 }
  0x91   :  { %v238_v10 = vpop.permute.xlu0 %237 }
  0x94   :  { %v222_v7 = vpop.permute.xlu1 %221 }
  0x98   :  { %v226_v9 = vpop.permute.xlu1 %225 }
  0x9d   :  { %v246_v16 = vpop.permute.xlu1 %245 }
  0xd9   :  { %v580_v20 = vpop.f32.mrb[0].mxu0 }
  0xda   :  { %v153_v21 = vadd.f32 %v580_v20, %v53_v19  ;;  %v147_v22 = vpop.f32.mrb[1].mxu0 }
  0xdb   :  { %v148_v23 = vadd.f32 %v147_v22, %v48_v17  ;;  %v242_v17 = vpop.permute.xlu0 %241 }
  0xdc   :  { %v168_v25 = vsel %vm166_vm2, %v153_v21, 0.0  ;;  %v181_v26 = vmul.f32 %v153_v21, %v153_v21 }
  0xdd   :  { %v167_v27 = vsel %vm166_vm2, %v148_v23, 0.0  ;;  %v180_v28 = vmul.f32 %v148_v23, %v148_v23  ;;  %v583_v29 = vpop.f32.mrb[2].mxu0 }
  0xde   :  { %v185_v30 = vsel %vm166_vm2, %v181_v26, 0.0  ;;  %v169_v31 = vadd.f32 %v168_v25, %v167_v27  ;;  %v163_v32 = vadd.f32 %v583_v29, %v63_v24  ;;  %v157_v33 = vpop.f32.mrb[3].mxu0 }
  0xdf   :  { %v184_v34 = vsel %vm166_vm2, %v180_v28, 0.0  ;;  %v158_v35 = vadd.f32 %v157_v33, %v58_v18  ;;  %v36_v33 = vld [vmem:[%s797_s3 + $0x10] sm:$0xff] }
  0xe0   :  { %v186_v36 = vadd.f32 %v185_v30, %v184_v34  ;;  %v183_v37 = vmul.f32 %v163_v32, %v163_v32  ;;  %v172_v41 = vsel %vm166_vm2, %v163_v32, 0.0  ;;  %v37_v34 = vld [vmem:[%s797_s3 + $0x18] sm:$0xff] }
  0xe1   :  { %v170_v38 = vsel %vm166_vm2, %v158_v35, 0.0  ;;  %v182_v39 = vmul.f32 %v158_v35, %v158_v35 }
  0xe2   :  { %v171_v40 = vadd.f32 %v170_v38, %v169_v31  ;;  %v189_v45 = vsel %vm166_vm2, %v183_v37, 0.0  ;;  %v43_v37 = vld [vmem:[%s799_s6] sm:$0xf]  ;;  %v259_v38 = vpop.permute.xlu0 %258 }
  0xe3   :  { %v187_v42 = vsel %vm166_vm2, %v182_v39, 0.0  ;;  %465 = vperm.xlu1 %645, %v43_v37   ;;  %v264_v39 = vpop.permute.xlu1 %263 }
  0xe4   :  { %v173_v43 = vadd.f32 %v172_v41, %v171_v40  ;;  %v188_v44 = vadd.f32 %v187_v42, %v186_v36  ;;  %v658_v36 = vmov 0.0  }
  0xe5   :  { %606 = vmatprep.mubr.msk.f32.mxu0 %vm657_vm3, %v658_v36 }
  0xe6   :  { %v174_v46 = vrot.slane %v173_v43, 4  ;;  %v190_v47 = vadd.f32 %v189_v45, %v188_v44  ;;  %v274_v44 = vpop.permute.xlu0 %273 }
  0xe8   :  { %v175_v48 = vadd.f32 %v174_v46, %v173_v43  ;;  %v191_v49 = vrot.slane %v190_v47, 4 }
  0xea   :  { %v176_v50 = vrot.slane %v175_v48, 2  ;;  %v192_v51 = vadd.f32 %v191_v49, %v190_v47 }
  0xec   :  { %v177_v52 = vadd.f32 %v176_v50, %v175_v48  ;;  %v193_v53 = vrot.slane %v192_v51, 2 }
  0xee   :  { %v178_v54 = vrot.slane %v177_v52, 1  ;;  %v194_v55 = vadd.f32 %v193_v53, %v192_v51  ;;  %v269_v51 = vpop.permute.xlu1 %268 }
  0xf0   :  { %v179_v56 = vadd.f32 %v178_v54, %v177_v52  ;;  %v195_v57 = vrot.slane %v194_v55, 1 }
  0xf2   :  { %v196_v59 = vadd.f32 %v195_v57, %v194_v55  ;;  %v197_v60 = vmul.f32 0.03125, %v179_v56 }
  0xf4   :  { %v198_v61 = vmul.f32 0.03125, %v196_v59  ;;  %v199_v62 = vmul.f32 %v197_v60, %v197_v60  ;;  %v203_v63 = vsub.f32 %v153_v21, %v197_v60  ;;  %v204_v0 = vsub.f32 %v158_v35, %v197_v60 }
  0xf5   :  { %v202_v1 = vsub.f32 %v148_v23, %v197_v60  ;;  %v205_v2 = vsub.f32 %v163_v32, %v197_v60  ;;  %v35_v32 = vld [vmem:[%s797_s3 + $0x8] sm:$0xff]  ;;  %v656_v35 = vmov 0.0|0.0  }
  0xf6   :  { %v200_v3 = vsub.f32 %v198_v61, %v199_v62  ;;  %617 = vmatprep.subr.bf16.mxu0 %v656_v35 }
  0xf8   :  { %v201_v5 = vmax.f32 %v200_v3, 0.0 }
  0xfa   :  { %v206_v6 = vadd.f32 1e-05, %v201_v5 }
  0xfc   :  { %647 = vrsqrt.f32 %v206_v6 }
 0x106   :  { %v648_v11 = vpop.eup %647 }
 0x107   :  { %v209_v12 = vmul.f32 %v648_v11, %v203_v63  ;;  %v210_v13 = vmul.f32 %v648_v11, %v204_v0  ;;  %v208_v14 = vmul.f32 %v648_v11, %v202_v1  ;;  %v211_v15 = vmul.f32 %v648_v11, %v205_v2 }
 0x109   :  { %v229_v18 = vmul.f32 %v218_v58, %v209_v12  ;;  %v230_v19 = vmul.f32 %v222_v7, %v210_v13  ;;  %v228_v20 = vmul.f32 %v214_v8, %v208_v14  ;;  %v231_v21 = vmul.f32 %v226_v9, %v211_v15 }
 0x10b   :  { %v248_v22 = vadd.f32 %v234_v4, %v228_v20  ;;  %v249_v23 = vadd.f32 %v238_v10, %v229_v18  ;;  %v251_v24 = vadd.f32 %v246_v16, %v231_v21  ;;  %v250_v25 = vadd.f32 %v242_v17, %v230_v19  ;;  %v421_v17 = vpop.permute.xlu1 %420 }
 0x10d   :  { %v252_v26 = vmax.f32 %v248_v22, 0.0  ;;  %v253_v27 = vmax.f32 %v249_v23, 0.0  ;;  %v255_v28 = vmax.f32 %v251_v24, 0.0  ;;  %v254_v29 = vmax.f32 %v250_v25, 0.0 }
 0x10f   :  { %v613_v30 = vpack.c.bf16 %v255_v28, %v254_v29  ;;  %v609_v31 = vpack.c.bf16 %v253_v27, %v252_v26  ;;  %v441_v26 = vpop.permute.xlu1 %440  ;;  %v425_v28 = vpop.permute.xlu0 %424 }
 0x111   :  { %610 = vmatprep.subr.bf16.mxu1 %v609_v31 }
 0x112   :  { %612 = vmatpush3.bf16.msra.mxu1 %v609_v31 }
 0x113   :  { %614 = vmatprep.subr.bf16.mxu1 %v613_v30  ;;  %v445_v29 = vpop.permute.xlu1 %444 }
 0x116   :  { %616 = vmatpush3.bf16.msra.mxu1 %v613_v30  ;;  %v429_v30 = vpop.permute.xlu0 %428 }
 0x117   :  { %v433_v31 = vpop.permute.xlu1 %432 }
 0x119   :  { %593 = vmatmul.mubr.msk.f32.vlgmr.msra.gmra.mrb[0].mxu1 %vm276_vm1, %v35_v32 }
 0x11a   :  { %595 = vmatprep.mubr.msk.f32.mxu1 %vm276_vm1, %v36_v33 }
 0x11d   :  { %596 = vmatmul.mubr.msk.f32.gmra.mrb[2].mxu1 %vm276_vm1, %v37_v34 }
 0x1ec   :  { %v594_v40 = vpop.f32.mrb[0].mxu1 }
 0x1ed   :  { %v361_v41 = vadd.f32 %v594_v40, %v264_v39  ;;  %v355_v42 = vpop.f32.mrb[1].mxu1  ;;  %v449_v39 = vpop.permute.xlu0 %448 }
 0x1ee   :  { %v356_v43 = vadd.f32 %v355_v42, %v259_v38  ;;  %v453_v38 = vpop.permute.xlu1 %452 }
 0x1ef   :  { %v375_v45 = vsel %vm166_vm2, %v361_v41, 0.0  ;;  %v388_v46 = vmul.f32 %v361_v41, %v361_v41 }
 0x1f0   :  { %v374_v47 = vsel %vm166_vm2, %v356_v43, 0.0  ;;  %v387_v48 = vmul.f32 %v356_v43, %v356_v43  ;;  %v597_v49 = vpop.f32.mrb[2].mxu1 }
 0x1f1   :  { %v392_v50 = vsel %vm166_vm2, %v388_v46, 0.0  ;;  %v376_v52 = vadd.f32 %v375_v45, %v374_v47  ;;  %v371_v53 = vadd.f32 %v597_v49, %v274_v44  ;;  %v365_v54 = vpop.f32.mrb[3].mxu1 }
 0x1f2   :  { %v391_v55 = vsel %vm166_vm2, %v387_v48, 0.0  ;;  %v366_v56 = vadd.f32 %v365_v54, %v269_v51  ;;  %v42_v54 = vld [vmem:[%s800_s5] sm:$0xf] }
 0x1f3   :  { %v393_v57 = vadd.f32 %v392_v50, %v391_v55  ;;  %v390_v58 = vmul.f32 %v371_v53, %v371_v53  ;;  %v379_v62 = vsel %vm166_vm2, %v371_v53, 0.0  ;;  %v466_v55 = vpop.permute.xlu1 %465 }
 0x1f4   :  { %v377_v59 = vsel %vm166_vm2, %v366_v56, 0.0  ;;  %v389_v60 = vmul.f32 %v366_v56, %v366_v56 }
 0x1f5   :  { %v378_v61 = vadd.f32 %v377_v59, %v376_v52  ;;  %v396_v2 = vsel %vm166_vm2, %v390_v58, 0.0 }
 0x1f6   :  { %v394_v63 = vsel %vm166_vm2, %v389_v60, 0.0 }
 0x1f7   :  { %v380_v0 = vadd.f32 %v379_v62, %v378_v61  ;;  %v395_v1 = vadd.f32 %v394_v63, %v393_v57 }
 0x1f9   :  { %v381_v3 = vrot.slane %v380_v0, 4  ;;  %v397_v4 = vadd.f32 %v396_v2, %v395_v1 }
 0x1fb   :  { %v382_v5 = vadd.f32 %v381_v3, %v380_v0  ;;  %v398_v6 = vrot.slane %v397_v4, 4 }
 0x1fd   :  { %v383_v7 = vrot.slane %v382_v5, 2  ;;  %v399_v8 = vadd.f32 %v398_v6, %v397_v4 }
 0x1ff   :  { %v384_v9 = vadd.f32 %v383_v7, %v382_v5  ;;  %v400_v10 = vrot.slane %v399_v8, 2 }
 0x201   :  { %v385_v11 = vrot.slane %v384_v9, 1  ;;  %v401_v12 = vadd.f32 %v400_v10, %v399_v8 }
 0x203   :  { %v386_v13 = vadd.f32 %v385_v11, %v384_v9  ;;  %v402_v14 = vrot.slane %v401_v12, 1 }
 0x205   :  { %v403_v15 = vadd.f32 %v402_v14, %v401_v12  ;;  %v404_v16 = vmul.f32 0.03125, %v386_v13 }
 0x207   :  { %v405_v18 = vmul.f32 0.03125, %v403_v15  ;;  %v406_v19 = vmul.f32 %v404_v16, %v404_v16  ;;  %v409_v20 = vsub.f32 %v356_v43, %v404_v16  ;;  %v410_v21 = vsub.f32 %v361_v41, %v404_v16 }
 0x208   :  { %v411_v22 = vsub.f32 %v366_v56, %v404_v16  ;;  %v412_v23 = vsub.f32 %v371_v53, %v404_v16 }
 0x209   :  { %v407_v24 = vsub.f32 %v405_v18, %v406_v19 }
 0x20b   :  { %v408_v25 = vmax.f32 %v407_v24, 0.0 }
 0x20d   :  { %v413_v27 = vadd.f32 1e-05, %v408_v25 }
 0x20f   :  { %649 = vrsqrt.f32 %v413_v27 }
 0x219   :  { %v650_v32 = vpop.eup %649 }
 0x21a   :  { %v415_v33 = vmul.f32 %v650_v32, %v409_v20  ;;  %v416_v34 = vmul.f32 %v650_v32, %v410_v21  ;;  %v417_v36 = vmul.f32 %v650_v32, %v411_v22  ;;  %v418_v37 = vmul.f32 %v650_v32, %v412_v23 }
 0x21c   :  { %v435_v40 = vmul.f32 %v421_v17, %v415_v33  ;;  %v436_v41 = vmul.f32 %v425_v28, %v416_v34  ;;  %v437_v42 = vmul.f32 %v429_v30, %v417_v36  ;;  %v438_v43 = vmul.f32 %v433_v31, %v418_v37 }
 0x21e   :  { %v455_v44 = vadd.f32 %v441_v26, %v435_v40  ;;  %v456_v45 = vadd.f32 %v445_v29, %v436_v41  ;;  %v458_v46 = vadd.f32 %v453_v38, %v438_v43  ;;  %v457_v47 = vadd.f32 %v449_v39, %v437_v42 }
 0x220   :  { %v459_v48 = vmax.f32 %v455_v44, 0.0  ;;  %v460_v49 = vmax.f32 %v456_v45, 0.0  ;;  %v462_v50 = vmax.f32 %v458_v46, 0.0  ;;  %v461_v51 = vmax.f32 %v457_v47, 0.0 }
 0x222   :  { %v618_v52 = vpack.c.bf16 %v460_v49, %v459_v48  ;;  %v621_v53 = vpack.c.bf16 %v462_v50, %v461_v51 }
 0x224   :  { %619 = vmatpush3.bf16.msra.mxu0 %v618_v52 }
 0x225   :  { %620 = vmatprep.subr.bf16.mxu0 %v656_v35 }
 0x228   :  { %622 = vmatpush3.bf16.msra.mxu0 %v621_v53 }
 0x22b   :  { %607 = vmatmul.mubr.msk.f32.vlgmr.msra.gmra.mrb[4].mxu0 %vm276_vm1, %v42_v54 }
 0x2fe   :  { %v537_v56 = vpop.f32.mrb[4].mxu0 }
 0x2ff   :  { %v538_v57 = vadd.f32 %v537_v56, %v466_v55  ;;  %v608_v58 = vpop.f32.mrb[5].mxu0 }
 0x301   :  { %651 = vtanh.f32 %v538_v57 }
 0x30b   :  { %v652_v59 = vpop.eup %651 }
 0x30c   :  { %543 = vst.msk [vmem:[%s801_s7] sm:$0xf] %vm542_vm4, %v652_v59 }

</bundles_post_ra>
